<compile_context>
chip_gen: v7x
topology: tpu7x:2x2x1
jax: 0.10.0
libtpu: 0.0.40
codegen_flags: <defaults>
</compile_context>

<pallas_src>
import math
from typing import NamedTuple

import jax
import jax.numpy as jnp
import numpy as np
from jax.experimental import pallas as pl
from jax.experimental.pallas import tpu as pltpu

_MIB = 1024 * 1024


def _round_up(x, m):
    return (x + m - 1) // m * m


def _chip_info():
    """TPU generation -> (vmem_working_set_budget, vmem_limit_bytes, n_tensorcores)."""
    kind = ""
    try:
        kind = jax.devices()[0].device_kind.lower()
    except Exception:
        pass
    if "v7" in kind:
        # v7x: 64 MiB VMEM per TensorCore, 2 TCs/chip. Do NOT request the full
        # 64 MiB — leave headroom for compiler-internal scratch.
        return 40 * _MIB, 44 * _MIB, 2
    if "v5 lite" in kind or "v5e" in kind or "v6" in kind:
        # v5e / v6e: 128 MiB VMEM, 1 TC/chip.
        return 88 * _MIB, 96 * _MIB, 1
    # Unknown generation: conservative VMEM, assume multi-core so we still split.
    return 36 * _MIB, 40 * _MIB, 2


def _working_set_bytes(tm, tk, tn, isz):
    # Double-buffered x / weight / bias tiles + (double-buffered) f32 output tile
    # that also serves as the accumulator (no separate VMEM scratch).
    return (2 * tm * tk * isz          # x
            + 2 * tk * tn * isz        # masked W^T
            + 2 * 8 * tn * 4           # bias (sublane-padded)
            + 2 * tm * tn * 4)         # f32 output / accumulator


def _choose_kn_tiles(in_f, out_f, compute_dtype, vmem_budget):
    isz = jnp.dtype(compute_dtype).itemsize
    tk = min(1024 if isz == 2 else 512, _round_up(in_f, 128))
    tn = min(512, _round_up(out_f, 128))
    tm_nominal = 512
    # Shrink (rarely needed) while keeping 128-multiples.
    while _working_set_bytes(tm_nominal, tk, tn, isz) > vmem_budget and (tk > 128 or tn > 128):
        if tk >= tn and tk > 128:
            tk = max(128, _round_up(tk // 2, 128))
        elif tn > 128:
            tn = max(128, _round_up(tn // 2, 128))
    return tk, tn


def skeleton_linear_kernel(x_ref, w_ref, b_ref, o_ref):
    """One (tm, tn) output tile.

    Grid = (M, N, K). K (axis 2) is the reduction axis and MUST stay last and
    marked 'arbitrary': o_ref's block index is constant across K, so the output
    tile stays resident in VMEM and is the accumulator (no scratch needed).
    """
    k = pl.program_id(2)

    @pl.when(k == 0)
    def _init():
        # Initialize the resident f32 output tile with the broadcast bias.
        o_ref[...] = jnp.broadcast_to(b_ref[...], o_ref.shape)

    # Weight is pre-masked and pre-transposed: plain (tm,tk) @ (tk,tn) on the MXU.
    o_ref[...] += jnp.dot(x_ref[...], w_ref[...],
                          preferred_element_type=jnp.float32)


class SkeletonLinearParams(NamedTuple):
    wm_t: jax.Array   # (k_pad, n_pad)  pre-masked, transposed, padded, compute dtype
    bias: jax.Array   # (1, n_pad)      float32, padded
    in_f: int
    out_f: int
    tk: int
    tn: int


def prepare_skeleton_linear_params(weight, mask, bias, *, compute_dtype=jnp.float32):
    """Fold the (static) mask into the weight once, transpose to (in_f, out_f),
    pad K/N to the chip-aware tile grid and cast — all amortized out of the
    forward pass.

    NOTE: must be re-run after every weight update during training (the PyTorch
    module re-applies the mask each forward). bf16 compute is valid on all of
    v5e/v6e/v7x (MXU is bf16-native everywhere; accumulate/bias stay f32).
    """
    out_f, in_f = weight.shape
    assert mask.shape == weight.shape and bias.shape == (out_f,)

    vmem_budget, _, _ = _chip_info()
    tk, tn = _choose_kn_tiles(in_f, out_f, compute_dtype, vmem_budget)
    k_pad = _round_up(in_f, tk)
    n_pad = _round_up(out_f, tn)

    wm_t = (weight * mask).T.astype(compute_dtype)                    # (in_f, out_f)
    wm_t = jnp.pad(wm_t, ((0, k_pad - in_f), (0, n_pad - out_f)))     # (k_pad, n_pad)
    b_p = jnp.pad(bias.astype(jnp.float32), (0, n_pad - out_f)).reshape(1, n_pad)
    return SkeletonLinearParams(wm_t, b_p, in_f, out_f, tk, tn)


def skeleton_linear(x, params: SkeletonLinearParams, *, tm_max=512):
    """res = x @ (weight * mask).T + bias   (weight pre-folded/padded in params)."""
    batch, in_f = x.shape
    assert in_f == params.in_f
    k_pad, n_pad = params.wm_t.shape
    tk, tn = params.tk, params.tn
    compute_dtype = params.wm_t.dtype
    isz = jnp.dtype(compute_dtype).itemsize
    sub = 16 if jnp.dtype(compute_dtype) == jnp.dtype(jnp.bfloat16) else 8

    vmem_budget, vmem_limit, n_cores = _chip_info()

    # M tile: as large as the batch allows, shrunk only if VMEM would overflow.
    tm = min(tm_max, _round_up(batch, sub))
    while _working_set_bytes(tm, tk, tn, isz) > vmem_budget and tm > sub:
        tm = max(sub, _round_up(tm // 2, sub))
    m_pad = _round_up(batch, tm)

    # v7x: 2 TensorCores are sharded across 'parallel' grid axes — make sure at
    # least one parallel axis has >= 2 steps (prefer splitting N; keep 128-mult).
    if n_cores > 1 and (m_pad // tm) * (n_pad // tn) < 2:
        if tn % 256 == 0:
            tn //= 2
        elif tm % (2 * sub) == 0:
            tm //= 2
            m_pad = _round_up(batch, tm)

    x_p = jnp.pad(x.astype(compute_dtype),
                  ((0, m_pad - batch), (0, k_pad - in_f)))

    grid = (m_pad // tm, n_pad // tn, k_pad // tk)

    cost = pl.CostEstimate(
        flops=2 * m_pad * n_pad * k_pad,
        transcendentals=0,
        bytes_accessed=(m_pad * k_pad * isz * (n_pad // tn)       # x (re-read per N tile)
                        + k_pad * n_pad * isz * (m_pad // tm)     # weight (re-read per M tile)
                        + m_pad * n_pad * 4 + n_pad * 4),         # out + bias
    )

    out_p = pl.pallas_call(
        skeleton_linear_kernel,
        out_shape=jax.ShapeDtypeStruct((m_pad, n_pad), jnp.float32),
        grid_spec=pltpu.PrefetchScalarGridSpec(
            num_scalar_prefetch=0,
            grid=grid,
            in_specs=[
                pl.BlockSpec((tm, tk), lambda i, j, k: (i, k)),   # x
                pl.BlockSpec((tk, tn), lambda i, j, k: (k, j)),   # masked W^T
                pl.BlockSpec((1, tn), lambda i, j, k: (0, j)),    # bias
            ],
            out_specs=pl.BlockSpec((tm, tn), lambda i, j, k: (i, j)),
        ),
        compiler_params=pltpu.CompilerParams(
            dimension_semantics=("parallel", "parallel", "arbitrary"),
            vmem_limit_bytes=int(vmem_limit),
        ),
        cost_estimate=cost,
    )(x_p, params.wm_t, params.bias)

    return out_p[:batch, :params.out_f]


def init_skeleton_linear_params(key, in_channels, out_channels, node_num, edges):
    """Build (weight, mask, bias) with the same structure as SkeletonLinear.__init__."""
    in_f = in_channels * node_num
    out_f = out_channels * node_num
    weight = np.zeros((out_f, in_f), dtype=np.float32)
    mask = np.zeros((out_f, in_f), dtype=np.float32)

    # kaiming_uniform_(a=sqrt(5)) on an (out_channels, in_channels) block:
    # bound = sqrt(1/3) * sqrt(3/fan_in) = 1/sqrt(in_channels)
    kaiming_bound = 1.0 / math.sqrt(in_channels)

    keys = jax.random.split(key, edges.shape[1] + 1)
    for edge_idx in range(edges.shape[1]):
        src, dst = int(edges[0, edge_idx]), int(edges[1, edge_idx])
        tmp = np.asarray(
            jax.random.uniform(
                keys[edge_idx], (out_channels, in_channels),
                minval=-kaiming_bound, maxval=kaiming_bound, dtype=jnp.float32,
            )
        )
        r0, r1 = out_channels * dst, out_channels * (dst + 1)
        c0, c1 = in_channels * src, in_channels * (src + 1)
        mask[r0:r1, c0:c1] = 1.0
        weight[r0:r1, c0:c1] = tmp

    bias_bound = 1.0 / math.sqrt(in_f)
    bias = jax.random.uniform(
        keys[-1], (out_f,), minval=-bias_bound, maxval=bias_bound, dtype=jnp.float32
    )
    return jnp.asarray(weight), jnp.asarray(mask), bias


if __name__ == "__main__":
    key = jax.random.PRNGKey(0)

    # ---- Test 1: small shapes, f32 path (single-tile grid) ----------------
    in_channels, out_channels, node_num = 4, 8, 4
    batch = 8
    edges = np.array([[0, 1, 2, 0],
                      [1, 2, 3, 3]], dtype=np.int32)     # (2, num_edges)

    k_param, k_x, k_param2, k_x2 = jax.random.split(key, 4)
    weight, mask, bias = init_skeleton_linear_params(
        k_param, in_channels, out_channels, node_num, edges)
    x = jax.random.normal(k_x, (batch, in_channels * node_num), dtype=jnp.float32)

    params = prepare_skeleton_linear_params(weight, mask, bias)
    out = jax.block_until_ready(skeleton_linear(x, params))
    ref = x @ (weight * mask).T + bias
    assert out.shape == (batch, out_channels * node_num)
    np.testing.assert_allclose(np.asarray(out), np.asarray(ref), rtol=1e-5, atol=1e-5)

    # ---- Test 2: same shapes, bf16 compute path (f32 accumulate) ----------
    params_bf = prepare_skeleton_linear_params(
        weight, mask, bias, compute_dtype=jnp.bfloat16)
    out_bf = jax.block_until_ready(skeleton_linear(x, params_bf))
    np.testing.assert_allclose(np.asarray(out_bf), np.asarray(ref),
                               rtol=5e-2, atol=5e-2)

    # ---- Test 3: multi-tile grid (exercises K-reduction + parallel axes) --
    in_c2, out_c2, node2, batch2 = 8, 8, 20, 256
    chain = np.stack([np.arange(node2 - 1), np.arange(1, node2)]).astype(np.int32)
    weight2, mask2, bias2 = init_skeleton_linear_params(
        k_param2, in_c2, out_c2, node2, chain)
    x2 = jax.random.normal(k_x2, (batch2, in_c2 * node2), dtype=jnp.float32)

    params2 = prepare_skeleton_linear_params(weight2, mask2, bias2)
    out2 = jax.block_until_ready(skeleton_linear(x2, params2))
    ref2 = x2 @ (weight2 * mask2).T + bias2
    np.testing.assert_allclose(np.asarray(out2), np.asarray(ref2),
                               rtol=1e-4, atol=1e-4)

    print("KERNEL_OK")
</pallas_src>

<mosaic_0001>
module attributes {stable_mosaic.version = 11 : i64} {
  func.func @skeleton_linear_kernel(%arg0: i32, %arg1: i32, %arg2: i32, %arg3: memref<8x128xf32, #tpu.memory_space<vmem>>, %arg4: memref<128x128xf32, #tpu.memory_space<vmem>>, %arg5: memref<1x128xf32, #tpu.memory_space<vmem>>, %arg6: memref<8x128xf32, #tpu.memory_space<vmem>>) attributes {dimension_semantics = [#tpu.dimension_semantics<parallel>, #tpu.dimension_semantics<parallel>, #tpu.dimension_semantics<arbitrary>], iteration_bounds = array<i64: 1, 1, 1>, scalar_prefetch = 0 : i64, scratch_operands = 0 : i64, tpu.core_type = #tpu.core_type<tc>, window_params = [{transform_indices = @transform_0, window_bounds = array<i64: 8, 128>}, {transform_indices = @transform_1, window_bounds = array<i64: 128, 128>}, {transform_indices = @transform_2, window_bounds = array<i64: 1, 128>}, {transform_indices = @transform_3, window_bounds = array<i64: 8, 128>}]} {
    %c0_i32 = arith.constant 0 : i32
    %0 = arith.cmpi eq, %arg2, %c0_i32 : i32
    %1 = arith.extui %0 : i1 to i32
    %c0_i32_0 = arith.constant 0 : i32
    %2 = arith.cmpi ne, %1, %c0_i32_0 : i32
    scf.if %2 {
      %c0_8 = arith.constant 0 : index
      %c0_9 = arith.constant 0 : index
      %9 = vector.load %arg5[%c0_8, %c0_9] : memref<1x128xf32, #tpu.memory_space<vmem>>, vector<1x128xf32>
      %10 = vector.shape_cast %9 : vector<1x128xf32> to vector<1x128xf32>
      %11 = vector.broadcast %10 : vector<1x128xf32> to vector<8x128xf32>
      %c0_10 = arith.constant 0 : index
      %c0_11 = arith.constant 0 : index
      %12 = vector.load %arg6[%c0_10, %c0_11] : memref<8x128xf32, #tpu.memory_space<vmem>>, vector<8x128xf32>
      tpu.vector_store %arg6[%c0_10, %c0_11], %11 {strides = array<i32>} : memref<8x128xf32, #tpu.memory_space<vmem>>, vector<8x128xf32>,
    } else {
    }
    %c0 = arith.constant 0 : index
    %c0_1 = arith.constant 0 : index
    %3 = vector.load %arg6[%c0, %c0_1] : memref<8x128xf32, #tpu.memory_space<vmem>>, vector<8x128xf32>
    %c0_2 = arith.constant 0 : index
    %c0_3 = arith.constant 0 : index
    %4 = vector.load %arg3[%c0_2, %c0_3] : memref<8x128xf32, #tpu.memory_space<vmem>>, vector<8x128xf32>
    %c0_4 = arith.constant 0 : index
    %c0_5 = arith.constant 0 : index
    %5 = vector.load %arg4[%c0_4, %c0_5] : memref<128x128xf32, #tpu.memory_space<vmem>>, vector<128x128xf32>
    %cst = arith.constant dense<0.000000e+00> : vector<8x128xf32>
    %6 = tpu.matmul %4, %5, %cst {dimension_numbers = #tpu.dot_dimension_numbers<[1], [0], [0], [1], [0, 0, 1, 1], [], []>} : vector<8x128xf32>, vector<128x128xf32>, vector<8x128xf32> -> vector<8x128xf32>
    %7 = arith.addf %3, %6 : vector<8x128xf32>
    %c0_6 = arith.constant 0 : index
    %c0_7 = arith.constant 0 : index
    %8 = vector.load %arg6[%c0_6, %c0_7] : memref<8x128xf32, #tpu.memory_space<vmem>>, vector<8x128xf32>
    tpu.vector_store %arg6[%c0_6, %c0_7], %7 {strides = array<i32>} : memref<8x128xf32, #tpu.memory_space<vmem>>, vector<8x128xf32>,
    return
  }
  func.func @transform_0(%arg0: i32, %arg1: i32, %arg2: i32) -> (i32, i32) {
    %c0_i32 = arith.constant 0 : i32
    return %arg0, %arg2 : i32, i32
  }
  func.func @transform_1(%arg0: i32, %arg1: i32, %arg2: i32) -> (i32, i32) {
    %c0_i32 = arith.constant 0 : i32
    return %arg2, %arg1 : i32, i32
  }
  func.func @transform_2(%arg0: i32, %arg1: i32, %arg2: i32) -> (i32, i32) {
    %c0_i32 = arith.constant 0 : i32
    %c0_i32_0 = arith.constant 0 : i32
    return %c0_i32, %arg1 : i32, i32
  }
  func.func @transform_3(%arg0: i32, %arg1: i32, %arg2: i32) -> (i32, i32) {
    %c0_i32 = arith.constant 0 : i32
    return %arg0, %arg1 : i32, i32
  }
}

</mosaic_0001>

<bundles_post_ra>
// kernel: tpu_custom_call.1
= control target key start
LH: loop header
LB: loop body
LE: loop exit
PB: predicated region body
PF: predicated region fallthrough
CT: control target
= control target key end

     0   :  { %8 = vsyncpa [#allocation3], 0  ;;  %s390_s0 = inlined_call_operand.hbm [shape: f32[8,128], index: 0, kind: input, shape index: {}]   ;;  %s391_s1 = inlined_call_operand.hbm [shape: f32[128,128], index: 1, kind: input, shape index: {}]   ;;  %s392_s2 = inlined_call_operand.vmem [shape: f32[1,128], index: 2, kind: input, shape index: {}]   ;;  %s393_s3 = inlined_call_operand.hbm [shape: f32[8,128], index: 3, kind: output, shape index: {}]  }
   0x1   :  { %9 = vsyncpa [#allocation6], 0 }
   0x2   :  { %10 = vsyncpa [#allocation4], 0  ;;  %s316_s12 = smov [#allocation2]   ;;  %s317_s14 = smov [#allocation5]  }
   0x3   :  { %s17_s13 = sshll.u32 %s316_s12, 4  ;;  %s26_s15 = sshll.u32 %s317_s14, 4  ;;  %s18_s13 = int_to_ptr.vmem [resolvable:$true] %s17_s13  ;;  %s344_s15 = int_to_ptr.vmem [resolvable:$true] %s26_s15 }
   0x4   :  { %s244_s18 = scalar_lea.hbm %s390_s0, 128 }
   0x5   :  { %p245_p0 = scmp.ne.s32.totalorder %s390_s0, %s244_s18  ;;  %p248_p1 = scmp.lt.u32.totalorder %s244_s18, %s390_s0 }
   0x7   :  { %p250_p2 = pnand %p248_p1, %p245_p0 }
   0x9   :  { %253 = shalt.err (!%p250_p2)
}
   0xa   :  { %s254_s23 = scalar_lea.vmem %s18_s13, 128  ;;  %p259_p4 = scmp.lt.s32.totalorder %s18_s13, %s18_s13 }
   0xb   :  { %p255_p3 = scmp.ne.s32.totalorder %s18_s13, %s254_s23  ;;  %p260_p5 = scmp.lt.s32.totalorder %s254_s23, %s254_s23 }
   0xd   :  { %p261_p6 = por %p260_p5, %p259_p4 }
   0xf   :  { %p262_p7 = pnand %p261_p6, %p255_p3 }
  0x11   :  { %265 = shalt.err (!%p262_p7)
}
  0x12   :  { %20 = dma.hbm_to_vmem [thread:$0]  %s390_s0, 128, %s18_s13, [#allocation3]  }
  0x13   :  { %s266_s28 = scalar_lea.hbm %s391_s1, 2048 }
  0x14   :  { %p267_p8 = scmp.ne.s32.totalorder %s391_s1, %s266_s28  ;;  %p270_p9 = scmp.lt.u32.totalorder %s266_s28, %s391_s1 }
  0x16   :  { %p272_p10 = pnand %p270_p9, %p267_p8 }
  0x18   :  { %275 = shalt.err (!%p272_p10)
}
  0x19   :  { %s276_s6 = scalar_lea.vmem %s344_s15, 2048  ;;  %p281_p12 = scmp.lt.s32.totalorder %s344_s15, %s344_s15 }
  0x1a   :  { %p277_p11 = scmp.ne.s32.totalorder %s344_s15, %s276_s6  ;;  %p282_p13 = scmp.lt.s32.totalorder %s276_s6, %s276_s6 }
  0x1c   :  { %p283_p0 = por %p282_p13, %p281_p12 }
  0x1e   :  { %p284_p1 = pnand %p283_p0, %p277_p11 }
  0x20   :  { %287 = shalt.err (!%p284_p1)
}
  0x21   :  { %s318_s0 = smov 128   ;;  %s319_s7 = smov 8  }
  0x22   :  { %32 = dma.hbm_to_vmem [thread:$0]  %s391_s1, 2048, %s344_s15, [#allocation6], %s318_s0, %s318_s0, %s319_s7  }
  0x23   :  { %310 = dma.done.wait [#allocation3], 128  }
  0x24   :  { %311 = vsyncadd [#allocation3], 4294967168 }
  0x25   :  { %312 = dma.done.wait [#allocation6], 2048  }
  0x26   :  { %313 = vsyncadd [#allocation6], 4294965248  ;;  %v320_v0 = vmov 0.0|0.0   ;;  %vm321_vm0 = vmmov 0   ;;  %v322_v1 = vmov 0.0   ;;  %v55_v2 = vld [vmem:[#allocation5] sm:$0xff] }
  0x27   :  { %212 = vmatprep.subr.bf16.mxu0 %v320_v0  ;;  %209 = vmatprep.mubr.msk.f32.mxu0 %vm321_vm0, %v322_v1  ;;  %v56_v3 = vld [vmem:[#allocation5 + $0x8] sm:$0xff]  ;;  %v57_v4 = vld [vmem:[#allocation5 + $0x10] sm:$0xff]  ;;  %v58_v6 = vld [vmem:[#allocation5 + $0x18] sm:$0xff]  ;;  %s323_s11 = smov [#allocation7]  }
  0x28   :  { %v213_v5 = vpack.c.bf16 %v56_v3, %v55_v2  ;;  %v216_v7 = vpack.c.bf16 %v58_v6, %v57_v4  ;;  %v59_v8 = vld [vmem:[#allocation5 + $0x20] sm:$0xff]  ;;  %v60_v9 = vld [vmem:[#allocation5 + $0x28] sm:$0xff]  ;;  %v61_v11 = vld [vmem:[#allocation5 + $0x30] sm:$0xff]  ;;  %s149_s12 = sshll.u32 %s323_s11, 4  ;;  %s150_s12 = int_to_ptr.vmem [resolvable:$true] %s149_s12 }
  0x29   :  { %v219_v10 = vpack.c.bf16 %v60_v9, %v59_v8  ;;  %v62_v12 = vld [vmem:[#allocation5 + $0x38] sm:$0xff]  ;;  %v63_v14 = vld [vmem:[#allocation5 + $0x40] sm:$0xff]  ;;  %v64_v15 = vld [vmem:[#allocation5 + $0x48] sm:$0xff]  ;;  %s288_s13 = scalar_lea.vmem %s150_s12, 128  ;;  %p293_p3 = scmp.lt.s32.totalorder %s150_s12, %s150_s12 }
  0x2a   :  { %214 = vmatpush3.bf16.msra.mxu0 %v213_v5  ;;  %v222_v13 = vpack.c.bf16 %v62_v12, %v61_v11  ;;  %v225_v16 = vpack.c.bf16 %v64_v15, %v63_v14  ;;  %v65_v17 = vld [vmem:[#allocation5 + $0x50] sm:$0xff]  ;;  %v66_v18 = vld [vmem:[#allocation5 + $0x58] sm:$0xff]  ;;  %v67_v20 = vld [vmem:[#allocation5 + $0x60] sm:$0xff]  ;;  %p289_p2 = scmp.ne.s32.totalorder %s150_s12, %s288_s13  ;;  %p294_p4 = scmp.lt.s32.totalorder %s288_s13, %s288_s13 }
  0x2b   :  { %215 = vmatprep.subr.bf16.mxu0 %v320_v0  ;;  %v228_v19 = vpack.c.bf16 %v66_v18, %v65_v17  ;;  %v68_v21 = vld [vmem:[#allocation5 + $0x68] sm:$0xff]  ;;  %v69_v23 = vld [vmem:[#allocation5 + $0x70] sm:$0xff]  ;;  %v70_v24 = vld [vmem:[#allocation5 + $0x78] sm:$0xff] }
  0x2c   :  { %v231_v22 = vpack.c.bf16 %v68_v21, %v67_v20  ;;  %v234_v25 = vpack.c.bf16 %v70_v24, %v69_v23  ;;  %v54_v26 = vld [vmem:[#allocation2] sm:$0xff]  ;;  %p295_p5 = por %p294_p4, %p293_p3 }
  0x2d   :  { %v159_v27 = vld [vmem:[%s392_s2] ss:$0 sm:$0xff] }
  0x2e   :  { %217 = vmatpush3.bf16.msra.mxu0 %v216_v7  ;;  %p296_p6 = pnand %p295_p5, %p289_p2 }
  0x2f   :  { %218 = vmatprep.subr.bf16.mxu0 %v320_v0 }
  0x32   :  { %220 = vmatpush3.bf16.msra.mxu0 %v219_v10 }
  0x33   :  { %221 = vmatprep.subr.bf16.mxu0 %v320_v0 }
  0x36   :  { %223 = vmatpush3.bf16.msra.mxu0 %v222_v13 }
  0x37   :  { %224 = vmatprep.subr.bf16.mxu0 %v320_v0 }
  0x3a   :  { %226 = vmatpush3.bf16.msra.mxu0 %v225_v16 }
  0x3b   :  { %227 = vmatprep.subr.bf16.mxu0 %v320_v0 }
  0x3e   :  { %229 = vmatpush3.bf16.msra.mxu0 %v228_v19 }
  0x3f   :  { %230 = vmatprep.subr.bf16.mxu0 %v320_v0 }
  0x42   :  { %232 = vmatpush3.bf16.msra.mxu0 %v231_v22 }
  0x43   :  { %233 = vmatprep.subr.bf16.mxu0 %v320_v0 }
  0x46   :  { %235 = vmatpush3.bf16.msra.mxu0 %v234_v25 }
  0x49   :  { %210 = vmatmul.mubr.f32.vlgmr.msra.gmra.mrb[0].mxu0 %v54_v26 }
 0x11c   :  { %v137_v28 = vpop.f32.mrb[0].mxu0 }
 0x11d   :  { %v141_v29 = vadd.f32 %v159_v27, %v137_v28  ;;  %v211_v30 = vpop.f32.mrb[1].mxu0 }
 0x11f   :  { %142 = vst [vmem:[#allocation7] sm:$0xff] %v141_v29 }
 0x120   :  { %299 = shalt.err (!%p296_p6)
}
 0x121   :  { %s300_s16 = scalar_lea.hbm %s393_s3, 128 }
 0x122   :  { %p301_p7 = scmp.ne.s32.totalorder %s393_s3, %s300_s16  ;;  %p304_p8 = scmp.lt.u32.totalorder %s300_s16, %s393_s3 }
 0x124   :  { %p306_p9 = pnand %p304_p8, %p301_p7 }
 0x126   :  { %309 = shalt.err (!%p306_p9)
}
 0x127   :  { %152 = dma.vmem_to_hbm [thread:$0]  %s150_s12, 128, %s393_s3, [#allocation4]  }
 0x128   :  { %314 = dma.done.wait [#allocation4], 128  }
 0x129   :  { %315 = vsyncadd [#allocation4], 4294967168 }
 0x12a   :  { %156 = vsyncpa [#allocation3], 1 }
 0x12b   :  { %157 = vsyncpa [#allocation6], 1 }
 0x12c   :  { %158 = vsyncpa [#allocation4], 1 }

</bundles_post_ra>
